<compile_context>
chip_gen: v5e
topology: v5e:2x2
jax: 0.10.0
libtpu: 0.0.40
codegen_flags: <defaults>
</compile_context>

<pallas_src>
import functools

import jax
import jax.numpy as jnp
from jax.experimental import pallas as pl
from jax.experimental.pallas import tpu as pltpu

BN_EPS = 1e-5
VMEM_LIMIT = 48 * 1024 * 1024  # safe on v5e/v6e (128 MiB) and v7x (64 MiB)


def _choose_tile(total, cap):
    """Largest divisor of `total` that is <= cap (always >= 1)."""
    t = max(1, min(total, cap))
    while total % t:
        t -= 1
    return t


# ---------------------------------------------------------------------------
# Fused Conv2d(3x3, pad=1) + BatchNorm (folded) + ReLU
# ---------------------------------------------------------------------------
def _conv3x3_kernel(x0_ref, x1_ref, x2_ref, w_ref, s_ref, b_ref, o_ref):
    """One output row: out = relu((sum_{dy,dx} x[h+dy, w+dx] @ W[dy,dx]) * s + b)."""
    w_out = o_ref.shape[2]
    rows = (x0_ref, x1_ref, x2_ref)
    acc = None
    for dy in range(3):
        for dx in range(3):
            # (w_out, Cin) window, static offset load; cast to bf16 for the MXU.
            xs = rows[dy][0, 0, pl.ds(dx, w_out), :].astype(jnp.bfloat16)
            part = jnp.dot(xs, w_ref[dy, dx], preferred_element_type=jnp.float32)
            acc = part if acc is None else acc + part
    y = acc * s_ref[...] + b_ref[...]          # (w_out, co) * (1, co) + (1, co)
    y = jnp.maximum(y, 0.0)
    o_ref[0, 0] = y.astype(o_ref.dtype)


def conv3x3_bn_relu(x, w, scale, bias, *, out_dtype=jnp.bfloat16):
    """x: (N,H,W,Cin) -> (N,H,W,Cout); w: (3,3,Cin,Cout); per-channel affine."""
    N, H, W, Cin = x.shape
    Cout = w.shape[-1]
    co_tile = Cout if Cout <= 512 else _choose_tile(Cout, 256)
    n_co = Cout // co_tile
    # Zero-pad H and W by 1 (the only XLA-side data movement for the conv).
    xp = jnp.pad(x.astype(jnp.float32), ((0, 0), (1, 1), (1, 1), (0, 0)))
    wb = w.astype(jnp.bfloat16)
    s2 = scale.reshape(1, Cout).astype(jnp.float32)
    b2 = bias.reshape(1, Cout).astype(jnp.float32)
    row_block = (1, 1, W + 2, Cin)
    return pl.pallas_call(
        _conv3x3_kernel,
        out_shape=jax.ShapeDtypeStruct((N, H, W, Cout), out_dtype),
        grid_spec=pltpu.PrefetchScalarGridSpec(
            num_scalar_prefetch=0,
            grid=(N, H, n_co),
            in_specs=[
                pl.BlockSpec(row_block, lambda n, h, j: (n, h, 0, 0)),      # dy = 0
                pl.BlockSpec(row_block, lambda n, h, j: (n, h + 1, 0, 0)),  # dy = 1
                pl.BlockSpec(row_block, lambda n, h, j: (n, h + 2, 0, 0)),  # dy = 2
                pl.BlockSpec((3, 3, Cin, co_tile), lambda n, h, j: (0, 0, 0, j)),
                pl.BlockSpec((1, co_tile), lambda n, h, j: (0, j)),
                pl.BlockSpec((1, co_tile), lambda n, h, j: (0, j)),
            ],
            out_specs=pl.BlockSpec((1, 1, W, co_tile), lambda n, h, j: (n, h, 0, j)),
        ),
        compiler_params=pltpu.CompilerParams(
            dimension_semantics=("parallel", "parallel", "parallel"),
            vmem_limit_bytes=VMEM_LIMIT),
    )(xp, xp, xp, wb, s2, b2)


# ---------------------------------------------------------------------------
# MaxPool2d(kernel_size=2, stride=2)
# ---------------------------------------------------------------------------
def _maxpool_kernel(x_ref, o_ref):
    C = o_ref.shape[-1]
    x = x_ref[...]                               # (th, 2, Wo, 2C)
    h = jnp.maximum(x[:, 0], x[:, 1])            # max over the row pair
    o_ref[...] = jnp.maximum(h[:, :, :C], h[:, :, C:])   # max over the col pair


def maxpool2x2(x):
    """NHWC max pool; single read of x, tiled & pipelined over row blocks."""
    N, H, W, C = x.shape
    Ho, Wo = H // 2, W // 2
    # Free reshape: (N,H,W,C) -> (N*Ho, 2, Wo, 2C); dim 1 is the H-pair,
    # lane halves [0:C]/[C:2C] are the W-pair.
    xr = x.reshape(N * Ho, 2, Wo, 2 * C)
    row_bytes = 2 * Wo * 2 * C * x.dtype.itemsize
    max_rows = max(1, (2 * 1024 * 1024) // row_bytes)
    th = _choose_tile(N * Ho, max_rows)
    out = pl.pallas_call(
        _maxpool_kernel,
        out_shape=jax.ShapeDtypeStruct((N * Ho, Wo, C), x.dtype),
        grid_spec=pltpu.PrefetchScalarGridSpec(
            num_scalar_prefetch=0,
            grid=(N * Ho // th,),
            in_specs=[pl.BlockSpec((th, 2, Wo, 2 * C), lambda i: (i, 0, 0, 0))],
            out_specs=pl.BlockSpec((th, Wo, C), lambda i: (i, 0, 0)),
        ),
        compiler_params=pltpu.CompilerParams(
            dimension_semantics=("parallel",),
            vmem_limit_bytes=VMEM_LIMIT),
    )(xr)
    return out.reshape(N, Ho, Wo, C)


# ---------------------------------------------------------------------------
# Tiled (x @ w) * scale + bias [+ ReLU]  (classifier Linear layers)
# ---------------------------------------------------------------------------
def _matmul_affine_kernel(x_ref, w_ref, s_ref, b_ref, o_ref, acc_ref, *, apply_relu):
    k = pl.program_id(2)

    @pl.when(k == 0)
    def _():
        acc_ref[...] = jnp.zeros_like(acc_ref)

    acc_ref[...] += jnp.dot(x_ref[...], w_ref[...],
                            preferred_element_type=jnp.float32)

    @pl.when(k == pl.num_programs(2) - 1)
    def _():
        y = acc_ref[...] * s_ref[...] + b_ref[...]
        if apply_relu:
            y = jnp.maximum(y, 0.0)
        o_ref[...] = y.astype(o_ref.dtype)


def matmul_affine(x, w, scale, bias, *, relu, out_dtype):
    M, K = x.shape
    K2, N = w.shape
    assert K == K2
    tm = _choose_tile(M, 256)
    tn = _choose_tile(N, 512)
    tk = _choose_tile(K, 1024)
    grid = (M // tm, N // tn, K // tk)
    xb = x.astype(jnp.bfloat16)
    wb = w.astype(jnp.bfloat16)
    s2 = scale.reshape(1, N).astype(jnp.float32)
    b2 = bias.reshape(1, N).astype(jnp.float32)
    kernel = functools.partial(_matmul_affine_kernel, apply_relu=relu)
    return pl.pallas_call(
        kernel,
        out_shape=jax.ShapeDtypeStruct((M, N), out_dtype),
        grid_spec=pltpu.PrefetchScalarGridSpec(
            num_scalar_prefetch=0,
            grid=grid,
            in_specs=[
                pl.BlockSpec((tm, tk), lambda i, j, k: (i, k)),
                pl.BlockSpec((tk, tn), lambda i, j, k: (k, j)),
                pl.BlockSpec((1, tn), lambda i, j, k: (0, j)),
                pl.BlockSpec((1, tn), lambda i, j, k: (0, j)),
            ],
            out_specs=pl.BlockSpec((tm, tn), lambda i, j, k: (i, j)),
            scratch_shapes=[pltpu.VMEM((tm, tn), jnp.float32)],
        ),
        compiler_params=pltpu.CompilerParams(
            dimension_semantics=("parallel", "parallel", "arbitrary"),
            vmem_limit_bytes=VMEM_LIMIT),
    )(xb, wb, s2, b2)


def linear(x, w, b, *, relu, out_dtype):
    """nn.Linear (+ optional ReLU); pads the output dim to 128 lanes."""
    K, N = w.shape
    Np = ((N + 127) // 128) * 128
    if Np != N:
        w = jnp.pad(w, ((0, 0), (0, Np - N)))
        b = jnp.pad(b, ((0, Np - N),))
    ones = jnp.ones((Np,), jnp.float32)
    y = matmul_affine(x, w, ones, b, relu=relu, out_dtype=out_dtype)
    return y[:, :N] if Np != N else y


# ---------------------------------------------------------------------------
# Parameters / forward pass
# ---------------------------------------------------------------------------
def init_params(key, cfg):
    """Deterministic synthetic parameters matching the module's shapes."""
    feats = []
    in_c = 3
    for v in cfg:
        if v == 'M':
            feats.append({'type': 'pool'})
            continue
        key, kw, kb = jax.random.split(key, 3)
        fan_in = 9 * in_c
        feats.append({
            'type': 'conv',
            'out_c': v,
            'w': jax.random.normal(kw, (3, 3, in_c, v), jnp.float32)
                 * (1.0 / (fan_in ** 0.5)),
            'b': jax.random.normal(kb, (v,), jnp.float32) * 0.01,
            # BatchNorm2d default init / running stats (eval mode).
            'gamma': jnp.ones((v,), jnp.float32),
            'beta': jnp.zeros((v,), jnp.float32),
            'mean': jnp.zeros((v,), jnp.float32),
            'var': jnp.ones((v,), jnp.float32),
        })
        in_c = v
    clf = []
    for din, dout in [(512, 4096), (4096, 4096), (4096, 10)]:
        key, kw, kb = jax.random.split(key, 3)
        clf.append((jax.random.normal(kw, (din, dout), jnp.float32)
                    * (1.0 / (din ** 0.5)),
                    jax.random.normal(kb, (dout,), jnp.float32) * 0.01))
    return {'features': feats, 'classifier': clf}


def vgg16_forward(params, x_nchw):
    x = jnp.transpose(x_nchw, (0, 2, 3, 1)).astype(jnp.float32)  # NCHW -> NHWC
    for layer in params['features']:
        if layer['type'] == 'pool':
            x = maxpool2x2(x)
        else:
            # Fold conv bias + BatchNorm (eval) into a per-channel affine.
            scale = layer['gamma'] / jnp.sqrt(layer['var'] + BN_EPS)
            bias = (layer['b'] - layer['mean']) * scale + layer['beta']
            x = conv3x3_bn_relu(x, layer['w'], scale, bias)
    # nn.AvgPool2d(kernel_size=1, stride=1) is an identity op.
    x = jnp.transpose(x, (0, 3, 1, 2))          # back to NCHW
    out = x.reshape(x.shape[0], -1)             # PyTorch view(B, -1) order
    (w1, b1), (w2, b2), (w3, b3) = params['classifier']
    out = linear(out, w1, b1, relu=True, out_dtype=jnp.bfloat16)
    # TODO(synk): nn.Dropout is identity in eval/inference mode; train-mode
    # stochastic dropout is intentionally not implemented here.
    out = linear(out, w2, b2, relu=True, out_dtype=jnp.bfloat16)
    out = linear(out, w3, b3, relu=False, out_dtype=jnp.float32)
    return out


if __name__ == "__main__":
    # Small VGG-style cfg: final features are 32 channels x 4x4 = 512,
    # matching the hard-coded classifier Linear(512, 4096).
    cfg = [8, 'M', 32, 'M']
    key = jax.random.PRNGKey(0)
    key, kx = jax.random.split(key)
    x = jax.random.normal(kx, (2, 3, 16, 16), jnp.float32)   # NCHW, like PyTorch
    params = init_params(key, cfg)

    out = vgg16_forward(params, x)
    out = jax.block_until_ready(out)
    assert out.shape == (2, 10), out.shape
    assert bool(jnp.all(jnp.isfinite(out)))
    print("KERNEL_OK")
</pallas_src>

<mosaic_0001>
module attributes {stable_mosaic.version = 11 : i64} {
  func.func @_conv3x3_kernel(%arg0: i32, %arg1: i32, %arg2: i32, %arg3: memref<1x1x18x3xf32, #tpu.memory_space<vmem>>, %arg4: memref<1x1x18x3xf32, #tpu.memory_space<vmem>>, %arg5: memref<1x1x18x3xf32, #tpu.memory_space<vmem>>, %arg6: memref<3x3x3x8xbf16, #tpu.memory_space<vmem>>, %arg7: memref<1x8xf32, #tpu.memory_space<vmem>>, %arg8: memref<1x8xf32, #tpu.memory_space<vmem>>, %arg9: memref<1x1x16x8xbf16, #tpu.memory_space<vmem>>) attributes {dimension_semantics = [#tpu.dimension_semantics<parallel>, #tpu.dimension_semantics<parallel>, #tpu.dimension_semantics<parallel>], iteration_bounds = array<i64: 2, 16, 1>, scalar_prefetch = 0 : i64, scratch_operands = 0 : i64, tpu.core_type = #tpu.core_type<tc>, window_params = [{transform_indices = @transform_0, window_bounds = array<i64: 1, 1, 18, 3>}, {transform_indices = @transform_1, window_bounds = array<i64: 1, 1, 18, 3>}, {transform_indices = @transform_2, window_bounds = array<i64: 1, 1, 18, 3>}, {transform_indices = @transform_3, window_bounds = array<i64: 3, 3, 3, 8>}, {transform_indices = @transform_4, window_bounds = array<i64: 1, 8>}, {transform_indices = @transform_5, window_bounds = array<i64: 1, 8>}, {transform_indices = @transform_6, window_bounds = array<i64: 1, 1, 16, 8>}]} {
    %c0 = arith.constant 0 : index
    %c0_0 = arith.constant 0 : index
    %c0_1 = arith.constant 0 : index
    %c0_2 = arith.constant 0 : index
    %0 = vector.load %arg3[%c0, %c0_0, %c0_1, %c0_2] : memref<1x1x18x3xf32, #tpu.memory_space<vmem>>, vector<1x1x16x3xf32>
    %1 = vector.shape_cast %0 : vector<1x1x16x3xf32> to vector<16x3xf32>
    %2 = arith.truncf %1 : vector<16x3xf32> to vector<16x3xbf16>
    %c0_3 = arith.constant 0 : index
    %c0_4 = arith.constant 0 : index
    %c0_5 = arith.constant 0 : index
    %c0_6 = arith.constant 0 : index
    %3 = vector.load %arg6[%c0_3, %c0_4, %c0_5, %c0_6] : memref<3x3x3x8xbf16, #tpu.memory_space<vmem>>, vector<1x1x3x8xbf16>
    %4 = vector.shape_cast %3 : vector<1x1x3x8xbf16> to vector<3x8xbf16>
    %cst = arith.constant dense<0.000000e+00> : vector<16x8xf32>
    %5 = tpu.matmul %2, %4, %cst {dimension_numbers = #tpu.dot_dimension_numbers<[1], [0], [0], [1], [0, 0, 1, 1], [], []>} : vector<16x3xbf16>, vector<3x8xbf16>, vector<16x8xf32> -> vector<16x8xf32>
    %c0_7 = arith.constant 0 : index
    %c0_8 = arith.constant 0 : index
    %c1 = arith.constant 1 : index
    %c0_9 = arith.constant 0 : index
    %6 = vector.load %arg3[%c0_7, %c0_8, %c1, %c0_9] : memref<1x1x18x3xf32, #tpu.memory_space<vmem>>, vector<1x1x16x3xf32>
    %7 = vector.shape_cast %6 : vector<1x1x16x3xf32> to vector<16x3xf32>
    %8 = arith.truncf %7 : vector<16x3xf32> to vector<16x3xbf16>
    %c0_10 = arith.constant 0 : index
    %c1_11 = arith.constant 1 : index
    %c0_12 = arith.constant 0 : index
    %c0_13 = arith.constant 0 : index
    %9 = vector.load %arg6[%c0_10, %c1_11, %c0_12, %c0_13] : memref<3x3x3x8xbf16, #tpu.memory_space<vmem>>, vector<1x1x3x8xbf16>
    %10 = vector.shape_cast %9 : vector<1x1x3x8xbf16> to vector<3x8xbf16>
    %cst_14 = arith.constant dense<0.000000e+00> : vector<16x8xf32>
    %11 = tpu.matmul %8, %10, %cst_14 {dimension_numbers = #tpu.dot_dimension_numbers<[1], [0], [0], [1], [0, 0, 1, 1], [], []>} : vector<16x3xbf16>, vector<3x8xbf16>, vector<16x8xf32> -> vector<16x8xf32>
    %12 = arith.addf %5, %11 : vector<16x8xf32>
    %c0_15 = arith.constant 0 : index
    %c0_16 = arith.constant 0 : index
    %c2 = arith.constant 2 : index
    %c0_17 = arith.constant 0 : index
    %13 = vector.load %arg3[%c0_15, %c0_16, %c2, %c0_17] : memref<1x1x18x3xf32, #tpu.memory_space<vmem>>, vector<1x1x16x3xf32>
    %14 = vector.shape_cast %13 : vector<1x1x16x3xf32> to vector<16x3xf32>
    %15 = arith.truncf %14 : vector<16x3xf32> to vector<16x3xbf16>
    %c0_18 = arith.constant 0 : index
    %c2_19 = arith.constant 2 : index
    %c0_20 = arith.constant 0 : index
    %c0_21 = arith.constant 0 : index
    %16 = vector.load %arg6[%c0_18, %c2_19, %c0_20, %c0_21] : memref<3x3x3x8xbf16, #tpu.memory_space<vmem>>, vector<1x1x3x8xbf16>
    %17 = vector.shape_cast %16 : vector<1x1x3x8xbf16> to vector<3x8xbf16>
    %cst_22 = arith.constant dense<0.000000e+00> : vector<16x8xf32>
    %18 = tpu.matmul %15, %17, %cst_22 {dimension_numbers = #tpu.dot_dimension_numbers<[1], [0], [0], [1], [0, 0, 1, 1], [], []>} : vector<16x3xbf16>, vector<3x8xbf16>, vector<16x8xf32> -> vector<16x8xf32>
    %19 = arith.addf %12, %18 : vector<16x8xf32>
    %c0_23 = arith.constant 0 : index
    %c0_24 = arith.constant 0 : index
    %c0_25 = arith.constant 0 : index
    %c0_26 = arith.constant 0 : index
    %20 = vector.load %arg4[%c0_23, %c0_24, %c0_25, %c0_26] : memref<1x1x18x3xf32, #tpu.memory_space<vmem>>, vector<1x1x16x3xf32>
    %21 = vector.shape_cast %20 : vector<1x1x16x3xf32> to vector<16x3xf32>
    %22 = arith.truncf %21 : vector<16x3xf32> to vector<16x3xbf16>
    %c1_27 = arith.constant 1 : index
    %c0_28 = arith.constant 0 : index
    %c0_29 = arith.constant 0 : index
    %c0_30 = arith.constant 0 : index
    %23 = vector.load %arg6[%c1_27, %c0_28, %c0_29, %c0_30] : memref<3x3x3x8xbf16, #tpu.memory_space<vmem>>, vector<1x1x3x8xbf16>
    %24 = vector.shape_cast %23 : vector<1x1x3x8xbf16> to vector<3x8xbf16>
    %cst_31 = arith.constant dense<0.000000e+00> : vector<16x8xf32>
    %25 = tpu.matmul %22, %24, %cst_31 {dimension_numbers = #tpu.dot_dimension_numbers<[1], [0], [0], [1], [0, 0, 1, 1], [], []>} : vector<16x3xbf16>, vector<3x8xbf16>, vector<16x8xf32> -> vector<16x8xf32>
    %26 = arith.addf %19, %25 : vector<16x8xf32>
    %c0_32 = arith.constant 0 : index
    %c0_33 = arith.constant 0 : index
    %c1_34 = arith.constant 1 : index
    %c0_35 = arith.constant 0 : index
    %27 = vector.load %arg4[%c0_32, %c0_33, %c1_34, %c0_35] : memref<1x1x18x3xf32, #tpu.memory_space<vmem>>, vector<1x1x16x3xf32>
    %28 = vector.shape_cast %27 : vector<1x1x16x3xf32> to vector<16x3xf32>
    %29 = arith.truncf %28 : vector<16x3xf32> to vector<16x3xbf16>
    %c1_36 = arith.constant 1 : index
    %c1_37 = arith.constant 1 : index
    %c0_38 = arith.constant 0 : index
    %c0_39 = arith.constant 0 : index
    %30 = vector.load %arg6[%c1_36, %c1_37, %c0_38, %c0_39] : memref<3x3x3x8xbf16, #tpu.memory_space<vmem>>, vector<1x1x3x8xbf16>
    %31 = vector.shape_cast %30 : vector<1x1x3x8xbf16> to vector<3x8xbf16>
    %cst_40 = arith.constant dense<0.000000e+00> : vector<16x8xf32>
    %32 = tpu.matmul %29, %31, %cst_40 {dimension_numbers = #tpu.dot_dimension_numbers<[1], [0], [0], [1], [0, 0, 1, 1], [], []>} : vector<16x3xbf16>, vector<3x8xbf16>, vector<16x8xf32> -> vector<16x8xf32>
    %33 = arith.addf %26, %32 : vector<16x8xf32>
    %c0_41 = arith.constant 0 : index
    %c0_42 = arith.constant 0 : index
    %c2_43 = arith.constant 2 : index
    %c0_44 = arith.constant 0 : index
    %34 = vector.load %arg4[%c0_41, %c0_42, %c2_43, %c0_44] : memref<1x1x18x3xf32, #tpu.memory_space<vmem>>, vector<1x1x16x3xf32>
    %35 = vector.shape_cast %34 : vector<1x1x16x3xf32> to vector<16x3xf32>
    %36 = arith.truncf %35 : vector<16x3xf32> to vector<16x3xbf16>
    %c1_45 = arith.constant 1 : index
    %c2_46 = arith.constant 2 : index
    %c0_47 = arith.constant 0 : index
    %c0_48 = arith.constant 0 : index
    %37 = vector.load %arg6[%c1_45, %c2_46, %c0_47, %c0_48] : memref<3x3x3x8xbf16, #tpu.memory_space<vmem>>, vector<1x1x3x8xbf16>
    %38 = vector.shape_cast %37 : vector<1x1x3x8xbf16> to vector<3x8xbf16>
    %cst_49 = arith.constant dense<0.000000e+00> : vector<16x8xf32>
    %39 = tpu.matmul %36, %38, %cst_49 {dimension_numbers = #tpu.dot_dimension_numbers<[1], [0], [0], [1], [0, 0, 1, 1], [], []>} : vector<16x3xbf16>, vector<3x8xbf16>, vector<16x8xf32> -> vector<16x8xf32>
    %40 = arith.addf %33, %39 : vector<16x8xf32>
    %c0_50 = arith.constant 0 : index
    %c0_51 = arith.constant 0 : index
    %c0_52 = arith.constant 0 : index
    %c0_53 = arith.constant 0 : index
    %41 = vector.load %arg5[%c0_50, %c0_51, %c0_52, %c0_53] : memref<1x1x18x3xf32, #tpu.memory_space<vmem>>, vector<1x1x16x3xf32>
    %42 = vector.shape_cast %41 : vector<1x1x16x3xf32> to vector<16x3xf32>
    %43 = arith.truncf %42 : vector<16x3xf32> to vector<16x3xbf16>
    %c2_54 = arith.constant 2 : index
    %c0_55 = arith.constant 0 : index
    %c0_56 = arith.constant 0 : index
    %c0_57 = arith.constant 0 : index
    %44 = vector.load %arg6[%c2_54, %c0_55, %c0_56, %c0_57] : memref<3x3x3x8xbf16, #tpu.memory_space<vmem>>, vector<1x1x3x8xbf16>
    %45 = vector.shape_cast %44 : vector<1x1x3x8xbf16> to vector<3x8xbf16>
    %cst_58 = arith.constant dense<0.000000e+00> : vector<16x8xf32>
    %46 = tpu.matmul %43, %45, %cst_58 {dimension_numbers = #tpu.dot_dimension_numbers<[1], [0], [0], [1], [0, 0, 1, 1], [], []>} : vector<16x3xbf16>, vector<3x8xbf16>, vector<16x8xf32> -> vector<16x8xf32>
    %47 = arith.addf %40, %46 : vector<16x8xf32>
    %c0_59 = arith.constant 0 : index
    %c0_60 = arith.constant 0 : index
    %c1_61 = arith.constant 1 : index
    %c0_62 = arith.constant 0 : index
    %48 = vector.load %arg5[%c0_59, %c0_60, %c1_61, %c0_62] : memref<1x1x18x3xf32, #tpu.memory_space<vmem>>, vector<1x1x16x3xf32>
    %49 = vector.shape_cast %48 : vector<1x1x16x3xf32> to vector<16x3xf32>
    %50 = arith.truncf %49 : vector<16x3xf32> to vector<16x3xbf16>
    %c2_63 = arith.constant 2 : index
    %c1_64 = arith.constant 1 : index
    %c0_65 = arith.constant 0 : index
    %c0_66 = arith.constant 0 : index
    %51 = vector.load %arg6[%c2_63, %c1_64, %c0_65, %c0_66] : memref<3x3x3x8xbf16, #tpu.memory_space<vmem>>, vector<1x1x3x8xbf16>
    %52 = vector.shape_cast %51 : vector<1x1x3x8xbf16> to vector<3x8xbf16>
    %cst_67 = arith.constant dense<0.000000e+00> : vector<16x8xf32>
    %53 = tpu.matmul %50, %52, %cst_67 {dimension_numbers = #tpu.dot_dimension_numbers<[1], [0], [0], [1], [0, 0, 1, 1], [], []>} : vector<16x3xbf16>, vector<3x8xbf16>, vector<16x8xf32> -> vector<16x8xf32>
    %54 = arith.addf %47, %53 : vector<16x8xf32>
    %c0_68 = arith.constant 0 : index
    %c0_69 = arith.constant 0 : index
    %c2_70 = arith.constant 2 : index
    %c0_71 = arith.constant 0 : index
    %55 = vector.load %arg5[%c0_68, %c0_69, %c2_70, %c0_71] : memref<1x1x18x3xf32, #tpu.memory_space<vmem>>, vector<1x1x16x3xf32>
    %56 = vector.shape_cast %55 : vector<1x1x16x3xf32> to vector<16x3xf32>
    %57 = arith.truncf %56 : vector<16x3xf32> to vector<16x3xbf16>
    %c2_72 = arith.constant 2 : index
    %c2_73 = arith.constant 2 : index
    %c0_74 = arith.constant 0 : index
    %c0_75 = arith.constant 0 : index
    %58 = vector.load %arg6[%c2_72, %c2_73, %c0_74, %c0_75] : memref<3x3x3x8xbf16, #tpu.memory_space<vmem>>, vector<1x1x3x8xbf16>
    %59 = vector.shape_cast %58 : vector<1x1x3x8xbf16> to vector<3x8xbf16>
    %cst_76 = arith.constant dense<0.000000e+00> : vector<16x8xf32>
    %60 = tpu.matmul %57, %59, %cst_76 {dimension_numbers = #tpu.dot_dimension_numbers<[1], [0], [0], [1], [0, 0, 1, 1], [], []>} : vector<16x3xbf16>, vector<3x8xbf16>, vector<16x8xf32> -> vector<16x8xf32>
    %61 = arith.addf %54, %60 : vector<16x8xf32>
    %c0_77 = arith.constant 0 : index
    %c0_78 = arith.constant 0 : index
    %62 = vector.load %arg7[%c0_77, %c0_78] : memref<1x8xf32, #tpu.memory_space<vmem>>, vector<1x8xf32>
    %63 = vector.broadcast %62 : vector<1x8xf32> to vector<16x8xf32>
    %64 = arith.mulf %61, %63 : vector<16x8xf32>
    %c0_79 = arith.constant 0 : index
    %c0_80 = arith.constant 0 : index
    %65 = vector.load %arg8[%c0_79, %c0_80] : memref<1x8xf32, #tpu.memory_space<vmem>>, vector<1x8xf32>
    %66 = vector.broadcast %65 : vector<1x8xf32> to vector<16x8xf32>
    %67 = arith.addf %64, %66 : vector<16x8xf32>
    %cst_81 = arith.constant 0.000000e+00 : f32
    %68 = vector.broadcast %cst_81 : f32 to vector<16x8xf32>
    %69 = arith.maximumf %67, %68 : vector<16x8xf32>
    %70 = arith.truncf %69 : vector<16x8xf32> to vector<16x8xbf16>
    %c0_82 = arith.constant 0 : index
    %c0_83 = arith.constant 0 : index
    %c0_84 = arith.constant 0 : index
    %c0_85 = arith.constant 0 : index
    %71 = vector.load %arg9[%c0_82, %c0_83, %c0_84, %c0_85] : memref<1x1x16x8xbf16, #tpu.memory_space<vmem>>, vector<1x1x16x8xbf16>
    %72 = vector.shape_cast %71 : vector<1x1x16x8xbf16> to vector<16x8xbf16>
    %73 = vector.shape_cast %70 : vector<16x8xbf16> to vector<1x1x16x8xbf16>
    tpu.vector_store %arg9[%c0_82, %c0_83, %c0_84, %c0_85], %73 {strides = array<i32>} : memref<1x1x16x8xbf16, #tpu.memory_space<vmem>>, vector<1x1x16x8xbf16>,
    return
  }
  func.func @transform_0(%arg0: i32, %arg1: i32, %arg2: i32) -> (i32, i32, i32, i32) {
    %c0_i32 = arith.constant 0 : i32
    %c0_i32_0 = arith.constant 0 : i32
    %c0_i32_1 = arith.constant 0 : i32
    return %arg0, %arg1, %c0_i32, %c0_i32_0 : i32, i32, i32, i32
  }
  func.func @transform_1(%arg0: i32, %arg1: i32, %arg2: i32) -> (i32, i32, i32, i32) {
    %c1_i32 = arith.constant 1 : i32
    %0 = arith.addi %arg1, %c1_i32 : i32
    %c0_i32 = arith.constant 0 : i32
    %c0_i32_0 = arith.constant 0 : i32
    %c0_i32_1 = arith.constant 0 : i32
    return %arg0, %0, %c0_i32, %c0_i32_0 : i32, i32, i32, i32
  }
  func.func @transform_2(%arg0: i32, %arg1: i32, %arg2: i32) -> (i32, i32, i32, i32) {
    %c2_i32 = arith.constant 2 : i32
    %0 = arith.addi %arg1, %c2_i32 : i32
    %c0_i32 = arith.constant 0 : i32
    %c0_i32_0 = arith.constant 0 : i32
    %c0_i32_1 = arith.constant 0 : i32
    return %arg0, %0, %c0_i32, %c0_i32_0 : i32, i32, i32, i32
  }
  func.func @transform_3(%arg0: i32, %arg1: i32, %arg2: i32) -> (i32, i32, i32, i32) {
    %c0_i32 = arith.constant 0 : i32
    %c0_i32_0 = arith.constant 0 : i32
    %c0_i32_1 = arith.constant 0 : i32
    %c0_i32_2 = arith.constant 0 : i32
    return %c0_i32, %c0_i32_0, %c0_i32_1, %arg2 : i32, i32, i32, i32
  }
  func.func @transform_4(%arg0: i32, %arg1: i32, %arg2: i32) -> (i32, i32) {
    %c0_i32 = arith.constant 0 : i32
    %c0_i32_0 = arith.constant 0 : i32
    return %c0_i32, %arg2 : i32, i32
  }
  func.func @transform_5(%arg0: i32, %arg1: i32, %arg2: i32) -> (i32, i32) {
    %c0_i32 = arith.constant 0 : i32
    %c0_i32_0 = arith.constant 0 : i32
    return %c0_i32, %arg2 : i32, i32
  }
  func.func @transform_6(%arg0: i32, %arg1: i32, %arg2: i32) -> (i32, i32, i32, i32) {
    %c0_i32 = arith.constant 0 : i32
    %c0_i32_0 = arith.constant 0 : i32
    return %arg0, %arg1, %c0_i32, %arg2 : i32, i32, i32, i32
  }
}

</mosaic_0001>

<bundles_post_ra>
// kernel: tpu_custom_call.1
= control target key start
LH: loop header
LB: loop body
LE: loop exit
PB: predicated region body
PF: predicated region fallthrough
CT: control target
= control target key end

     0   :  { %s1039_s21 = smov 0   ;;  %s1041_s22 = smov 0   ;;  %s1167_s0 = inlined_call_operand.vmem [shape: f32[2,18,18,3], index: 0, kind: input, shape index: {}]   ;;  %s1168_s1 = inlined_call_operand.vmem [shape: f32[2,18,18,3], index: 1, kind: input, shape index: {}]   ;;  %s1169_s2 = inlined_call_operand.vmem [shape: f32[2,18,18,3], index: 2, kind: input, shape index: {}]   ;;  %s1170_s3 = inlined_call_operand.vmem [shape: bf16[3,3,3,8], index: 3, kind: input, shape index: {}]   ;;  %s1171_s4 = inlined_call_operand.vmem [shape: f32[1,8], index: 4, kind: input, shape index: {}]   ;;  %s1172_s5 = inlined_call_operand.vmem [shape: f32[1,8], index: 5, kind: input, shape index: {}]   ;;  %s1173_s6 = inlined_call_operand.vmem [shape: bf16[2,16,16,8], index: 6, kind: output, shape index: {}]  }
   0x1   :  { %s1043_s23 = smov 0   ;;  %s1045_s24 = smov 0  }
   0x2   :  { %s1047_s25 = smov 0  }
   0x3 LB: > { %s31_s26 = sadd.s32 1, %s993_s23  ;;  %s35_s27 = sadd.s32 1, %s997_s24  ;;  %s1001_s25 = sphi %s1047_s25, %s16_s25   ;;  %s997_s24 = sphi %s1045_s24, %s1179_s24   ;;  %s993_s23 = sphi %s1043_s23, %s1178_s23   ;;  %s989_s22 = sphi %s1041_s22, %s1177_s22   ;;  %s985_s21 = sphi %s1039_s21, %s1176_s21  }
   0x4   : > { %p33_p0 = scmp.ge.s32.totalorder %s31_s26, 16  ;;  %p890_p1 = scmp.ge.s32.totalorder %s1001_s25, 1 }
   0x5   : > { %p306_p2 = scmp.lt.s32.totalorder %s1001_s25, 33 }
   0x6   : > { %s1181_s26 = smov (%p33_p0, %s31_s26), 0  ;;  %s1183_s27 = smov (!%p33_p0, %s35_s27), %s997_s24 }
   0x7   : > { %p307_p3 = pnand %p890_p1, %p306_p2  ;;  %p37_p4 = scmp.ge.s32.totalorder %s1183_s27, 2 }
   0x8   : > { %p377_p5 = scmp.lt.s32.totalorder (!%p307_p3), %s989_s22, 1  ;;  %p379_p6 = scmp.lt.s32.totalorder (!%p307_p3), %s985_s21, 17 }
   0x9   : > { %s1185_s27 = smov (%p37_p4, %s1183_s27), 0  ;;  %310 = sbr.rel (%p307_p3) target bundleno = 203 (0xcb), region = 44 }
   0xa   : > { %s386_s18 = sadd.s32 (!%p307_p3), 1, %s985_s21  ;;  %s397_s8 = sadd.s32 (!%p307_p3), 2, %s985_s21 }
   0xb   : > { %p1103_p7 = scmp.lt.s32.totalorder (!%p307_p3), %s386_s18, 17  ;;  %p1109_p8 = scmp.lt.s32.totalorder (!%p307_p3), %s397_s8, 17 }
   0xc   : > { %p420_p9 = scmp.lt.s32.totalorder (!%p307_p3), %s985_s21, 15 }
   0xe   : > { %v897_v0 = vld [vmem:[%s1170_s3 + $0x2] sm:$0x3]  ;;  %vm444_vm0 = vcmask 1040384   ;;  %vm445_vm1 = vcmask 1041408   ;;  %v1003_v1 = vmov 65535   ;;  %s1187_s22 = smov (!%p377_p5, %s989_s22), 1 }
   0xf   : > { %v446_v2 = vsel %vm444_vm0, 4294967295, %v1003_v1  ;;  %v434_v3 = vld [vmem:[%s1170_s3] sm:$0x3]  ;;  %v900_v4 = vld [vmem:[%s1170_s3 + $0x4] sm:$0x3]  ;;  %s380_s12 = scalar_select %p379_p6, %s985_s21, 17 }
  0x10   : > { %v447_v5 = vsel %vm445_vm1, %v446_v2, 0  ;;  %v902_v6 = vld [vmem:[%s1170_s3 + $0x6] sm:$0x3]  ;;  %v904_v11 = vld [vmem:[%s1170_s3 + $0x8] sm:$0x3]  ;;  %s1094_s17 = smul.u32 54, %s1187_s22 }
  0x11   : > { %v449_v7 = vand.u32 %v897_v0, %v447_v5  ;;  %v469_v8 = vand.u32 %v447_v5, %v434_v3  ;;  %v494_v9 = vand.u32 %v900_v4, %v447_v5  ;;  %v521_v10 = vand.u32 %v902_v6, %v447_v5  ;;  %v908_v12 = vld [vmem:[%s1170_s3 + $0xc] sm:$0x3]  ;;  %v910_v15 = vld [vmem:[%s1170_s3 + $0xe] sm:$0x3]  ;;  %v906_v16 = vld [vmem:[%s1170_s3 + $0xa] sm:$0x3] }
  0x12   : > { %v548_v13 = vand.u32 %v904_v11, %v447_v5  ;;  %v602_v14 = vand.u32 %v908_v12, %v447_v5  ;;  %s916_s30 = smul.u32 3, %s380_s12  ;;  %v629_v17 = vand.u32 %v910_v15, %v447_v5  ;;  %v575_v18 = vand.u32 %v906_v16, %v447_v5  ;;  %v912_v19 = vld [vmem:[%s1170_s3 + $0x10] sm:$0x3]  ;;  %s1189_s18 = smov (!%p1103_p7, %s386_s18), 17 }
  0x13   : > { %458 = vmatpush.bf16.msra.mxu0 %v449_v7  ;;  %478 = vmatpush.bf16.msra.mxu1 %v469_v8  ;;  %vm440_vm2 = vcmask 23552   ;;  %s1191_s8 = smov (!%p1109_p8, %s397_s8), 17  ;;  %v656_v27 = vand.u32 %v912_v19, %v447_v5  ;;  %s918_s19 = smul.u32 3, %s1189_s18  ;;  %vm690_vm3 = vcmask 60416  }
  0x14   : > { %503 = vmatpush.bf16.msra.mxu2 %v494_v9  ;;  %530 = vmatpush.bf16.msra.mxu3 %v521_v10  ;;  %s383_s9 = sadd.s32 %s1094_s17, %s916_s30  ;;  %s919_s20 = smul.u32 3, %s1191_s8  ;;  %v961_v9 = vld [vmem:[%s1171_s4] ss:$0 sm:$0xff] }
  0x15   : > { %s891_s11 = sshll.u32 %s383_s9, 3  ;;  %s393_s28 = sadd.s32 %s918_s19, %s1094_s17 }
  0x16   : > { %s385_s16 = scalar_lea.vmem %s1167_s0, %s891_s11  ;;  %s892_s29 = sshll.u32 %s393_s28, 3 }
  0x17   : > { %557 = vmatpush.bf16.msrb.mxu0 %v548_v13  ;;  %584 = vmatpush.bf16.msrb.mxu1 %v575_v18  ;;  %v435_v20 = vld [vmem:[%s385_s16 + $0x1] sm:$0xff]  ;;  %v436_v21 = vld [vmem:[%s385_s16 + $0x9] sm:$0xff]  ;;  %s404_s30 = sadd.s32 %s919_s20, %s1094_s17  ;;  %s395_s10 = scalar_lea.vmem %s1168_s1, %s892_s29 }
  0x18   : > { %611 = vmatpush.bf16.msrb.mxu2 %v602_v14  ;;  %638 = vmatpush.bf16.msrb.mxu3 %v629_v17  ;;  %v431_v22 = vld [vmem:[%s385_s16] sm:$0xff]  ;;  %v437_v23 = vpack.c.bf16 %v436_v21, %v435_v20  ;;  %v432_v24 = vld [vmem:[%s385_s16 + $0x8] sm:$0xff]  ;;  %s893_s11 = sshll.u32 %s404_s30, 3  ;;  %s1193_s21 = smov (!%p420_p9, %s985_s21), 15 }
  0x19   : > { %v485_v25 = vld [vmem:[%s385_s16 + $0x2] sm:$0xff]  ;;  %v486_v26 = vld [vmem:[%s385_s16 + $0xa] sm:$0xff]  ;;  %v433_v28 = vpack.c.bf16 %v432_v24, %v431_v22  ;;  %s406_s8 = scalar_lea.vmem %s1169_s2, %s893_s11  ;;  %s894_s17 = sshll.u32 %s1193_s21, 1  ;;  %v962_v14 = vld [vmem:[%s1172_s5] ss:$0 sm:$0xff] }
  0x1a   : > { %v487_v29 = vpack.c.bf16 %v486_v26, %v485_v25  ;;  %898 = vmatmul.msk.bf16.vlgmr.msra.gmra.mxu0 %vm440_vm2, %v437_v23  ;;  %v512_v30 = vld [vmem:[%s395_s10] sm:$0xff]  ;;  %v513_v31 = vld [vmem:[%s395_s10 + $0x8] sm:$0xff]  ;;  %s895_s13 = sshll.u32 %s1187_s22, 5 }
  0x1b   : > { %899 = vmatmul.msk.bf16.vlgmr.msra.gmra.mxu1 %vm440_vm2, %v433_v28  ;;  %665 = vmatpush.bf16.msra.mxu0 %v656_v27  ;;  %v514_v32 = vpack.c.bf16 %v513_v31, %v512_v30  ;;  %v539_v33 = vld [vmem:[%s395_s10 + $0x1] sm:$0xff]  ;;  %v540_v34 = vld [vmem:[%s395_s10 + $0x9] sm:$0xff]  ;;  %s427_s20 = sadd.s32 %s895_s13, %s894_s17 }
  0x1c   : > { %901 = vmatmul.msk.bf16.vlgmr.msra.gmra.mxu2 %vm440_vm2, %v487_v29  ;;  %v593_v35 = vld [vmem:[%s406_s8] sm:$0xff]  ;;  %v594_v36 = vld [vmem:[%s406_s8 + $0x8] sm:$0xff]  ;;  %v541_v39 = vpack.c.bf16 %v540_v34, %v539_v33  ;;  %s896_s28 = sshll.u32 %s427_s20, 2 }
  0x1d   : > { %903 = vmatmul.msk.bf16.vlgmr.msra.gmra.mxu3 %vm440_vm2, %v514_v32  ;;  %v566_v37 = vld [vmem:[%s395_s10 + $0x2] sm:$0xff]  ;;  %v567_v38 = vld [vmem:[%s395_s10 + $0xa] sm:$0xff]  ;;  %v595_v40 = vpack.c.bf16 %v594_v36, %v593_v35  ;;  %s429_s29 = scalar_lea.vmem %s1173_s6, %s896_s28 }
  0x1e   : > { %v568_v41 = vpack.c.bf16 %v567_v38, %v566_v37  ;;  %v620_v42 = vld [vmem:[%s406_s8 + $0x1] sm:$0xff]  ;;  %v621_v43 = vld [vmem:[%s406_s8 + $0x9] sm:$0xff] }
  0x1f   : > { %v622_v44 = vpack.c.bf16 %v621_v43, %v620_v42  ;;  %v647_v45 = vld [vmem:[%s406_s8 + $0x2] sm:$0xff]  ;;  %v648_v46 = vld [vmem:[%s406_s8 + $0xa] sm:$0xff] }
  0x20   : > { %v649_v47 = vpack.c.bf16 %v648_v46, %v647_v45 }
  0x2a   : > { %905 = vmatmul.msk.bf16.vlgmr.msrb.gmra.mxu0 %vm440_vm2, %v541_v39 }
  0x2b   : > { %907 = vmatmul.msk.bf16.vlgmr.msrb.gmra.mxu1 %vm440_vm2, %v568_v41 }
  0x2c   : > { %909 = vmatmul.msk.bf16.vlgmr.msrb.gmra.mxu2 %vm440_vm2, %v595_v40 }
  0x2d   : > { %911 = vmatmul.msk.bf16.vlgmr.msrb.gmra.mxu3 %vm440_vm2, %v622_v44 }
  0x3a   : > { %913 = vmatmul.msk.bf16.vlgmr.msra.gmra.mxu0 %vm440_vm2, %v649_v47 }
  0x97   : > { %v460_v48 = vpop.f32.mrf.mxu0 }
  0x98   : > { %v480_v49 = vpop.f32.mrf.mxu1 }
  0x99   : > { %v481_v53 = vadd.f32 %v480_v49, %v460_v48 }
  0x9f   : > { %v505_v50 = vpop.f32.mrf.mxu2  ;;  %v462_v51 = vpop.f32.mrf.mxu0 }
  0xa0   : > { %v482_v52 = vpop.f32.mrf.mxu1  ;;  %v532_v54 = vpop.f32.mrf.mxu3  ;;  %v510_v55 = vadd.f32 %v505_v50, %v481_v53 }
  0xa1   : > { %v483_v60 = vadd.f32 %v482_v52, %v462_v51 }
  0xa2   : > { %v537_v58 = vadd.f32 %v532_v54, %v510_v55 }
  0xa7   : > { %v507_v56 = vpop.f32.mrf.mxu2  ;;  %v559_v57 = vpop.f32.mrf.mxu0 }
  0xa8   : > { %v586_v59 = vpop.f32.mrf.mxu1  ;;  %v534_v61 = vpop.f32.mrf.mxu3  ;;  %v564_v62 = vadd.f32 %v559_v57, %v537_v58  ;;  %v511_v63 = vadd.f32 %v507_v56, %v483_v60 }
  0xaa   : > { %v591_v2 = vadd.f32 %v586_v59, %v564_v62  ;;  %v538_v3 = vadd.f32 %v534_v61, %v511_v63 }
  0xaf   : > { %v613_v0 = vpop.f32.mrf.mxu2  ;;  %v561_v1 = vpop.f32.mrf.mxu0 }
  0xb0   : > { %v618_v4 = vadd.f32 %v613_v0, %v591_v2  ;;  %v640_v5 = vpop.f32.mrf.mxu3  ;;  %v565_v6 = vadd.f32 %v561_v1, %v538_v3  ;;  %v588_v7 = vpop.f32.mrf.mxu1 }
  0xb2   : > { %v645_v8 = vadd.f32 %v640_v5, %v618_v4  ;;  %v592_v12 = vadd.f32 %v588_v7, %v565_v6 }
  0xb7   : > { %v615_v10 = vpop.f32.mrf.mxu2  ;;  %v667_v11 = vpop.f32.mrf.mxu0 }
  0xb8   : > { %v672_v13 = vadd.f32 %v667_v11, %v645_v8  ;;  %v619_v15 = vadd.f32 %v615_v10, %v592_v12  ;;  %v642_v17 = vpop.f32.mrf.mxu3 }
  0xba   : > { %v678_v16 = vmul.f32 %v961_v9, %v672_v13  ;;  %v646_v19 = vadd.f32 %v642_v17, %v619_v15 }
  0xbc   : > { %v684_v18 = vadd.f32 %v962_v14, %v678_v16 }
  0xbe   : > { %v686_v20 = vmax.f32 %v684_v18, 0.0 }
  0xbf   : > { %v669_v21 = vpop.f32.mrf.mxu0 }
  0xc0   : > { %v688_v22 = vpack.c.bf16 %v686_v20, %v686_v20  ;;  %v673_v23 = vadd.f32 %v669_v21, %v646_v19 }
  0xc2   : > { %691 = vst.msk [vmem:[%s429_s29] sm:$0xf] %vm690_vm3, %v688_v22  ;;  %v679_v24 = vmul.f32 %v961_v9, %v673_v23 }
  0xc4   : > { %v685_v25 = vadd.f32 %v962_v14, %v679_v24 }
  0xc6   : > { %v687_v26 = vmax.f32 %v685_v25, 0.0 }
  0xc8   : > { %v689_v27 = vpack.c.bf16 %v687_v26, %v687_v26 }
  0xca   : > { %692 = vst.msk [vmem:[%s429_s29 + $0x4] sm:$0xf] %vm690_vm3, %v689_v27 }
  0xcb PF: > { %s16_s25 = sadd.s32 1, %s1001_s25   ;;  %s1176_s21 = smov %s993_s23 }
  0xcc   : > { %p13_p10 = scmp.ge.s32.totalorder %s16_s25, 34   ;;  %s1177_s22 = smov %s997_s24 }
  0xcd   : > { %s1178_s23 = smov %s1181_s26  ;;  %s1179_s24 = smov %s1185_s27 }
  0xce   :  { %15 = sbr.rel (!%p13_p10) target bundleno = 3 (0x3), region = 97 }

</bundles_post_ra>
